<compile_context>
chip_gen: v5e
topology: v5e:2x2
jax: 0.10.0
libtpu: 0.0.40
codegen_flags: <defaults>
</compile_context>

<pallas_src>
import functools

import jax
import jax.numpy as jnp
from jax import lax
from jax.experimental import pallas as pl
from jax.experimental.pallas import tpu as pltpu


def _attention_kernel(x_ref, wq_ref, wkv_ref, wp_ref, bp_ref,
                      out_ref, attn_ref, k_scr, v_scr,
                      *, num_heads, block_q, kv_chunk):
    """One grid step handles one (batch, query-tile).

    x_ref    : (1, N, C)      VMEM bf16  (full sequence for this batch element)
    wq_ref   : (C, C)         VMEM bf16  (softmax scale folded in)
    wkv_ref  : (C, 2C)        VMEM bf16  ([Wk | Wv] fused, lane-dense)
    wp_ref   : (C, C)         VMEM bf16  (output projection, head-concat layout)
    bp_ref   : (1, C)         VMEM f32
    out_ref  : (1, TQ, C)     VMEM f32
    attn_ref : (1, H, TQ, N)  VMEM f32 or bf16
    k_scr    : (N, C)         VMEM bf16 scratch (persists across q-tiles)
    v_scr    : (N, C)         VMEM bf16 scratch
    """
    qt = pl.program_id(1)
    _, N, C = x_ref.shape
    H = num_heads
    D = C // H

    # --- K/V projection, computed once per batch element (first query tile). ---
    # Fused lane-dense (chunk, C) x (C, 2C) matmul, chunked over rows so the f32
    # intermediate stays O(kv_chunk * 2C); written directly to bf16 scratch.
    # No broadcast of x over heads: heads are lane slices of the fused layout.
    @pl.when(qt == 0)
    def _():
        off = 0
        while off < N:                                       # static Python loop
            cur = min(kv_chunk, N - off)
            x_chunk = x_ref[0, pl.ds(off, cur), :]                     # (cur, C) bf16
            kv = jnp.dot(x_chunk, wkv_ref[...],
                         preferred_element_type=jnp.float32)           # (cur, 2C) f32
            k_scr[pl.ds(off, cur), :] = kv[:, :C].astype(k_scr.dtype)
            v_scr[pl.ds(off, cur), :] = kv[:, C:].astype(v_scr.dtype)
            off += cur

    # --- Q projection for this query tile: one lane-dense (TQ, C) x (C, C) matmul
    #     (softmax scale already folded into wq). ---
    start = pl.multiple_of(qt * block_q, block_q)
    xq = x_ref[0, pl.ds(start, block_q), :]                            # (TQ, C) bf16
    q_full = jnp.dot(xq, wq_ref[...],
                     preferred_element_type=jnp.float32).astype(jnp.bfloat16)

    # --- Per-head scores + numerically stable softmax + PV.  H is small and
    #     static; each head is a lane slice, no (H, ...) broadcast temporaries. ---
    o_parts = []
    for h in range(H):
        lo = h * D
        q_h = q_full[:, lo:lo + D]                                     # (TQ, D) bf16
        k_h = k_scr[:, pl.ds(lo, D)]                                   # (N, D)  bf16
        s = lax.dot_general(q_h, k_h, (((1,), (1,)), ((), ())),
                            preferred_element_type=jnp.float32)        # (TQ, N) f32
        s = s - jnp.max(s, axis=-1, keepdims=True)
        p = jnp.exp(s)
        p = p * pl.reciprocal(jnp.sum(p, axis=-1, keepdims=True), approx=True)
        attn_ref[0, h] = p.astype(attn_ref.dtype)          # attn_drop: eval identity
        o_parts.append(
            jnp.dot(p.astype(jnp.bfloat16), v_scr[:, pl.ds(lo, D)],
                    preferred_element_type=jnp.float32).astype(jnp.bfloat16))

    # --- Output projection: concat heads along lanes (== PyTorch transpose+reshape)
    #     and one fused (TQ, C) x (C, C) matmul — head reduction happens inside the
    #     MXU f32 accumulator, no (H, TQ, C) temp. ---
    o_full = jnp.concatenate(o_parts, axis=-1)                         # (TQ, C) bf16
    out = jnp.dot(o_full, wp_ref[...], preferred_element_type=jnp.float32)
    out_ref[0] = (out + bp_ref[...]).astype(out_ref.dtype)  # proj_drop: eval identity


def _vmem_budget():
    """(vmem_limit_bytes, block_q cap) tuned per TPU generation."""
    cap = 64 * 1024 * 1024                     # conservative default (v7x-class)
    try:
        cap = int(getattr(pltpu.get_tpu_info(), "vmem_capacity_bytes", cap))
    except Exception:
        pass
    if cap <= 64 * 1024 * 1024:                # v7x-class core: 64 MiB VMEM
        return 56 * 1024 * 1024, 128
    return 100 * 1024 * 1024, 256              # v5e / v6e: 128 MiB VMEM


def _pick_block_q(n, cap):
    """Largest divisor of n <= cap, preferring 128-, then 16-, then 8-multiples."""
    if n <= cap:
        return n
    for step in (128, 16, 8):
        best = None
        for bq in range(step, cap + 1, step):
            if n % bq == 0:
                best = bq
        if best is not None:
            return best
    # TODO(synk): pad N up to a multiple of 128 with a masked key tail instead of
    # falling back to block_q=N (which scales the per-step attn tile as O(H*N^2)).
    return n


def attention_forward(x, w_qkv, w_proj, b_proj, *, num_heads,
                      block_q=None, attn_dtype=jnp.float32):
    """x: (B, N, C) f32.  w_qkv: (3C, C), w_proj: (C, C), b_proj: (C,) (PyTorch layout).

    Returns (out (B,N,C) f32, attn (B,H,N,N) attn_dtype).  Passing
    attn_dtype=jnp.bfloat16 halves the dominant HBM writeback for large N.
    """
    B, N, C = x.shape
    assert C % num_heads == 0
    H = num_heads
    D = C // H
    scale = float(D ** -0.5)

    vmem_limit, bq_cap = _vmem_budget()
    if block_q is None:
        block_q = _pick_block_q(N, bq_cap)
    assert N % block_q == 0, (N, block_q)
    kv_chunk = min(N, 512)

    w_qkv = jnp.asarray(w_qkv, jnp.float32)
    w_proj = jnp.asarray(w_proj, jnp.float32)
    b_proj = jnp.asarray(b_proj, jnp.float32)

    # Weight prep at trace time (zero kernel cost).  The qkv feature layout is
    # (3, H, D): first C columns of W^T are Q (head-major), then K, then V.
    wqkv_t = w_qkv.T                                             # (C, 3C)
    wq = (wqkv_t[:, :C] * scale).astype(jnp.bfloat16)            # (C, C), scale folded
    wkv = wqkv_t[:, C:].astype(jnp.bfloat16)                     # (C, 2C) = [Wk | Wv]
    wp = w_proj.T.astype(jnp.bfloat16)                           # (C, C)
    bp = b_proj.reshape(1, C).astype(jnp.float32)
    x_bf = x.astype(jnp.bfloat16)

    kernel = functools.partial(_attention_kernel, num_heads=H,
                               block_q=block_q, kv_chunk=kv_chunk)

    def build(single_buffer_weights):
        def wspec(shape):
            # Grid-invariant operands: single-buffer so no VMEM is wasted on a
            # second copy that is never refetched.
            idx = lambda b, q: (0,) * len(shape)
            if single_buffer_weights:
                return pl.BlockSpec(shape, idx, pipeline_mode=pl.Buffered(1))
            return pl.BlockSpec(shape, idx)

        return pl.pallas_call(
            kernel,
            out_shape=(
                jax.ShapeDtypeStruct((B, N, C), jnp.float32),
                jax.ShapeDtypeStruct((B, H, N, N), attn_dtype),
            ),
            grid_spec=pltpu.PrefetchScalarGridSpec(
                num_scalar_prefetch=0,
                grid=(B, N // block_q),
                in_specs=[
                    pl.BlockSpec((1, N, C), lambda b, q: (b, 0, 0)),   # x (reused across q-tiles)
                    wspec((C, C)),                                     # Wq (scaled)
                    wspec((C, 2 * C)),                                 # [Wk | Wv]
                    wspec((C, C)),                                     # Wproj
                    wspec((1, C)),                                     # bias
                ],
                out_specs=[
                    pl.BlockSpec((1, block_q, C), lambda b, q: (b, q, 0)),
                    pl.BlockSpec((1, H, block_q, N), lambda b, q: (b, 0, q, 0)),
                ],
                scratch_shapes=[
                    pltpu.VMEM((N, C), jnp.bfloat16),   # K cache (fused head layout)
                    pltpu.VMEM((N, C), jnp.bfloat16),   # V cache
                ],
            ),
            compiler_params=pltpu.CompilerParams(
                dimension_semantics=("parallel", "arbitrary"),
                vmem_limit_bytes=vmem_limit),
        )

    try:
        return build(True)(x_bf, wq, wkv, wp, bp)
    except Exception:
        # Fallback for JAX versions without single-buffer pipeline_mode support.
        return build(False)(x_bf, wq, wkv, wp, bp)


def _reference(x, w_qkv, w_proj, b_proj, num_heads):
    """Pure-JAX reference mirroring the PyTorch forward (dropout in eval mode)."""
    B, N, C = x.shape
    D = C // num_heads
    scale = (C // num_heads) ** -0.5
    qkv = x @ w_qkv.T                                            # (B, N, 3C)
    qkv = qkv.reshape(B, N, 3, num_heads, D).transpose(2, 0, 3, 1, 4)
    q, k, v = qkv[0], qkv[1], qkv[2]                             # (B, H, N, D)
    attn = jnp.einsum('bhnd,bhmd->bhnm', q, k) * scale
    attn = jax.nn.softmax(attn, axis=-1)
    o = jnp.einsum('bhnm,bhmd->bhnd', attn, v)
    o = o.transpose(0, 2, 1, 3).reshape(B, N, C)
    out = o @ w_proj.T + b_proj
    return out, attn


if __name__ == "__main__":
    key = jax.random.PRNGKey(0)

    def run_case(B, N, C, num_heads, block_q=None, attn_dtype=jnp.float32):
        kx, kqkv, kp, kb = jax.random.split(key, 4)
        x = jax.random.normal(kx, (B, N, C), dtype=jnp.float32)
        # Deterministic parameter init (nn.Linear-like scaling).
        w_qkv = jax.random.uniform(kqkv, (3 * C, C), jnp.float32, -1.0, 1.0) * (C ** -0.5)
        w_proj = jax.random.uniform(kp, (C, C), jnp.float32, -1.0, 1.0) * (C ** -0.5)
        b_proj = jax.random.uniform(kb, (C,), jnp.float32, -1.0, 1.0) * (C ** -0.5)

        out, attn = attention_forward(x, w_qkv, w_proj, b_proj, num_heads=num_heads,
                                      block_q=block_q, attn_dtype=attn_dtype)
        jax.block_until_ready((out, attn))

        ref_out, ref_attn = _reference(x, w_qkv, w_proj, b_proj, num_heads)
        assert out.shape == (B, N, C) and attn.shape == (B, num_heads, N, N)
        attn32 = attn.astype(jnp.float32)
        # bf16 MXU inputs with f32 accumulation -> tolerances loosened vs f32 reference.
        assert jnp.allclose(out, ref_out, atol=2e-2, rtol=2e-2), \
            float(jnp.max(jnp.abs(out - ref_out)))
        assert jnp.allclose(attn32, ref_attn, atol=2e-2, rtol=2e-2), \
            float(jnp.max(jnp.abs(attn32 - ref_attn)))

    # Small case matching the module defaults (single query tile).
    run_case(B=2, N=8, C=32, num_heads=2)
    # Multi-query-tile case exercising the (B, N // block_q) grid + K/V scratch reuse.
    run_case(B=2, N=16, C=32, num_heads=2, block_q=8)
    # bf16 attention-probability output (halves HBM writeback of the attn map).
    run_case(B=2, N=32, C=32, num_heads=2, block_q=16, attn_dtype=jnp.bfloat16)

    print("KERNEL_OK")
</pallas_src>

<mosaic_0001>
module attributes {stable_mosaic.version = 11 : i64} {
  func.func @_attention_kernel(%arg0: i32, %arg1: i32, %arg2: memref<1x8x32xbf16, #tpu.memory_space<vmem>>, %arg3: memref<32x32xbf16, #tpu.memory_space<vmem>>, %arg4: memref<32x64xbf16, #tpu.memory_space<vmem>>, %arg5: memref<32x32xbf16, #tpu.memory_space<vmem>>, %arg6: memref<1x32xf32, #tpu.memory_space<vmem>>, %arg7: memref<1x8x32xf32, #tpu.memory_space<vmem>>, %arg8: memref<1x2x8x8xf32, #tpu.memory_space<vmem>>, %arg9: memref<8x32xbf16, #tpu.memory_space<vmem>>, %arg10: memref<8x32xbf16, #tpu.memory_space<vmem>>) attributes {dimension_semantics = [#tpu.dimension_semantics<parallel>, #tpu.dimension_semantics<arbitrary>], iteration_bounds = array<i64: 2, 1>, scalar_prefetch = 0 : i64, scratch_operands = 2 : i64, tpu.core_type = #tpu.core_type<tc>, window_params = [{transform_indices = @transform_0, window_bounds = array<i64: 1, 8, 32>}, {pipeline_mode = #tpu.pipeline_mode<synchronous>, transform_indices = @transform_1, window_bounds = array<i64: 32, 32>}, {pipeline_mode = #tpu.pipeline_mode<synchronous>, transform_indices = @transform_2, window_bounds = array<i64: 32, 64>}, {pipeline_mode = #tpu.pipeline_mode<synchronous>, transform_indices = @transform_3, window_bounds = array<i64: 32, 32>}, {pipeline_mode = #tpu.pipeline_mode<synchronous>, transform_indices = @transform_4, window_bounds = array<i64: 1, 32>}, {transform_indices = @transform_5, window_bounds = array<i64: 1, 8, 32>}, {transform_indices = @transform_6, window_bounds = array<i64: 1, 2, 8, 8>}]} {
    %c0_i32 = arith.constant 0 : i32
    %0 = arith.cmpi eq, %arg1, %c0_i32 : i32
    %1 = arith.extui %0 : i1 to i32
    %c0_i32_0 = arith.constant 0 : i32
    %2 = arith.cmpi ne, %1, %c0_i32_0 : i32
    scf.if %2 {
      %c0_34 = arith.constant 0 : index
      %c0_35 = arith.constant 0 : index
      %c0_36 = arith.constant 0 : index
      %60 = vector.load %arg2[%c0_34, %c0_35, %c0_36] : memref<1x8x32xbf16, #tpu.memory_space<vmem>>, vector<1x8x32xbf16>
      %61 = vector.shape_cast %60 : vector<1x8x32xbf16> to vector<8x32xbf16>
      %c0_37 = arith.constant 0 : index
      %c0_38 = arith.constant 0 : index
      %62 = vector.load %arg4[%c0_37, %c0_38] : memref<32x64xbf16, #tpu.memory_space<vmem>>, vector<32x64xbf16>
      %cst_39 = arith.constant dense<0.000000e+00> : vector<8x64xf32>
      %63 = tpu.matmul %61, %62, %cst_39 {dimension_numbers = #tpu.dot_dimension_numbers<[1], [0], [0], [1], [0, 0, 1, 1], [], []>} : vector<8x32xbf16>, vector<32x64xbf16>, vector<8x64xf32> -> vector<8x64xf32>
      %64 = vector.extract_strided_slice %63 {offsets = [0, 0], sizes = [8, 32], strides = [1, 1]} : vector<8x64xf32> to vector<8x32xf32>
      %65 = arith.truncf %64 : vector<8x32xf32> to vector<8x32xbf16>
      %c0_40 = arith.constant 0 : index
      %c0_41 = arith.constant 0 : index
      %66 = vector.load %arg9[%c0_40, %c0_41] : memref<8x32xbf16, #tpu.memory_space<vmem>>, vector<8x32xbf16>
      tpu.vector_store %arg9[%c0_40, %c0_41], %65 {strides = array<i32>} : memref<8x32xbf16, #tpu.memory_space<vmem>>, vector<8x32xbf16>,
      %67 = vector.extract_strided_slice %63 {offsets = [0, 32], sizes = [8, 32], strides = [1, 1]} : vector<8x64xf32> to vector<8x32xf32>
      %68 = arith.truncf %67 : vector<8x32xf32> to vector<8x32xbf16>
      %c0_42 = arith.constant 0 : index
      %c0_43 = arith.constant 0 : index
      %69 = vector.load %arg10[%c0_42, %c0_43] : memref<8x32xbf16, #tpu.memory_space<vmem>>, vector<8x32xbf16>
      tpu.vector_store %arg10[%c0_42, %c0_43], %68 {strides = array<i32>} : memref<8x32xbf16, #tpu.memory_space<vmem>>, vector<8x32xbf16>,
    } else {
    }
    %c8_i32 = arith.constant 8 : i32
    %3 = arith.muli %arg1, %c8_i32 : i32
    %4 = tpu.assume_multiple %3, 8 : i32
    %c0 = arith.constant 0 : index
    %5 = arith.index_cast %4 : i32 to index
    %c0_1 = arith.constant 0 : index
    %6 = vector.load %arg2[%c0, %5, %c0_1] : memref<1x8x32xbf16, #tpu.memory_space<vmem>>, vector<1x8x32xbf16>
    %7 = vector.shape_cast %6 : vector<1x8x32xbf16> to vector<8x32xbf16>
    %c0_2 = arith.constant 0 : index
    %c0_3 = arith.constant 0 : index
    %8 = vector.load %arg3[%c0_2, %c0_3] : memref<32x32xbf16, #tpu.memory_space<vmem>>, vector<32x32xbf16>
    %cst = arith.constant dense<0.000000e+00> : vector<8x32xf32>
    %9 = tpu.matmul %7, %8, %cst {dimension_numbers = #tpu.dot_dimension_numbers<[1], [0], [0], [1], [0, 0, 1, 1], [], []>} : vector<8x32xbf16>, vector<32x32xbf16>, vector<8x32xf32> -> vector<8x32xf32>
    %10 = arith.truncf %9 : vector<8x32xf32> to vector<8x32xbf16>
    %11 = vector.extract_strided_slice %10 {offsets = [0, 0], sizes = [8, 16], strides = [1, 1]} : vector<8x32xbf16> to vector<8x16xbf16>
    %c0_4 = arith.constant 0 : index
    %c0_5 = arith.constant 0 : index
    %12 = vector.load %arg9[%c0_4, %c0_5] : memref<8x32xbf16, #tpu.memory_space<vmem>>, vector<8x16xbf16>
    %cst_6 = arith.constant dense<0.000000e+00> : vector<8x8xf32>
    %13 = tpu.matmul %11, %12, %cst_6 {dimension_numbers = #tpu.dot_dimension_numbers<[1], [1], [0], [0], [0, 0, 1, 0], [], []>} : vector<8x16xbf16>, vector<8x16xbf16>, vector<8x8xf32> -> vector<8x8xf32>
    %cst_7 = arith.constant dense<0xFF800000> : vector<8xf32>
    %14 = vector.multi_reduction <maximumf>, %13, %cst_7 [1] : vector<8x8xf32> to vector<8xf32>
    %15 = vector.shape_cast %14 : vector<8xf32> to vector<8x1xf32>
    %16 = vector.broadcast %15 : vector<8x1xf32> to vector<8x8xf32>
    %17 = arith.subf %13, %16 : vector<8x8xf32>
    %18 = math.exp %17 : vector<8x8xf32>
    %cst_8 = arith.constant dense<0.000000e+00> : vector<8xf32>
    %19 = vector.multi_reduction <add>, %18, %cst_8 [1] : vector<8x8xf32> to vector<8xf32>
    %20 = vector.shape_cast %19 : vector<8xf32> to vector<8x1xf32>
    %21 = tpu.reciprocal %20 {approx = true} : vector<8x1xf32> -> vector<8x1xf32>
    %22 = vector.broadcast %21 : vector<8x1xf32> to vector<8x8xf32>
    %23 = arith.mulf %18, %22 : vector<8x8xf32>
    %c0_9 = arith.constant 0 : index
    %c0_10 = arith.constant 0 : index
    %c0_11 = arith.constant 0 : index
    %c0_12 = arith.constant 0 : index
    %24 = vector.load %arg8[%c0_9, %c0_10, %c0_11, %c0_12] : memref<1x2x8x8xf32, #tpu.memory_space<vmem>>, vector<1x1x8x8xf32>
    %25 = vector.shape_cast %24 : vector<1x1x8x8xf32> to vector<8x8xf32>
    %26 = vector.shape_cast %23 : vector<8x8xf32> to vector<1x1x8x8xf32>
    tpu.vector_store %arg8[%c0_9, %c0_10, %c0_11, %c0_12], %26 {strides = array<i32>} : memref<1x2x8x8xf32, #tpu.memory_space<vmem>>, vector<1x1x8x8xf32>,
    %27 = arith.truncf %23 : vector<8x8xf32> to vector<8x8xbf16>
    %c0_13 = arith.constant 0 : index
    %c0_14 = arith.constant 0 : index
    %28 = vector.load %arg10[%c0_13, %c0_14] : memref<8x32xbf16, #tpu.memory_space<vmem>>, vector<8x16xbf16>
    %cst_15 = arith.constant dense<0.000000e+00> : vector<8x16xf32>
    %29 = tpu.matmul %27, %28, %cst_15 {dimension_numbers = #tpu.dot_dimension_numbers<[1], [0], [0], [1], [0, 0, 1, 1], [], []>} : vector<8x8xbf16>, vector<8x16xbf16>, vector<8x16xf32> -> vector<8x16xf32>
    %30 = arith.truncf %29 : vector<8x16xf32> to vector<8x16xbf16>
    %31 = vector.extract_strided_slice %10 {offsets = [0, 16], sizes = [8, 16], strides = [1, 1]} : vector<8x32xbf16> to vector<8x16xbf16>
    %c0_16 = arith.constant 0 : index
    %c16 = arith.constant 16 : index
    %32 = vector.load %arg9[%c0_16, %c16] : memref<8x32xbf16, #tpu.memory_space<vmem>>, vector<8x16xbf16>
    %cst_17 = arith.constant dense<0.000000e+00> : vector<8x8xf32>
    %33 = tpu.matmul %31, %32, %cst_17 {dimension_numbers = #tpu.dot_dimension_numbers<[1], [1], [0], [0], [0, 0, 1, 0], [], []>} : vector<8x16xbf16>, vector<8x16xbf16>, vector<8x8xf32> -> vector<8x8xf32>
    %cst_18 = arith.constant dense<0xFF800000> : vector<8xf32>
    %34 = vector.multi_reduction <maximumf>, %33, %cst_18 [1] : vector<8x8xf32> to vector<8xf32>
    %35 = vector.shape_cast %34 : vector<8xf32> to vector<8x1xf32>
    %36 = vector.broadcast %35 : vector<8x1xf32> to vector<8x8xf32>
    %37 = arith.subf %33, %36 : vector<8x8xf32>
    %38 = math.exp %37 : vector<8x8xf32>
    %cst_19 = arith.constant dense<0.000000e+00> : vector<8xf32>
    %39 = vector.multi_reduction <add>, %38, %cst_19 [1] : vector<8x8xf32> to vector<8xf32>
    %40 = vector.shape_cast %39 : vector<8xf32> to vector<8x1xf32>
    %41 = tpu.reciprocal %40 {approx = true} : vector<8x1xf32> -> vector<8x1xf32>
    %42 = vector.broadcast %41 : vector<8x1xf32> to vector<8x8xf32>
    %43 = arith.mulf %38, %42 : vector<8x8xf32>
    %c0_20 = arith.constant 0 : index
    %c1 = arith.constant 1 : index
    %c0_21 = arith.constant 0 : index
    %c0_22 = arith.constant 0 : index
    %44 = vector.load %arg8[%c0_20, %c1, %c0_21, %c0_22] : memref<1x2x8x8xf32, #tpu.memory_space<vmem>>, vector<1x1x8x8xf32>
    %45 = vector.shape_cast %44 : vector<1x1x8x8xf32> to vector<8x8xf32>
    %46 = vector.shape_cast %43 : vector<8x8xf32> to vector<1x1x8x8xf32>
    tpu.vector_store %arg8[%c0_20, %c1, %c0_21, %c0_22], %46 {strides = array<i32>} : memref<1x2x8x8xf32, #tpu.memory_space<vmem>>, vector<1x1x8x8xf32>,
    %47 = arith.truncf %43 : vector<8x8xf32> to vector<8x8xbf16>
    %c0_23 = arith.constant 0 : index
    %c16_24 = arith.constant 16 : index
    %48 = vector.load %arg10[%c0_23, %c16_24] : memref<8x32xbf16, #tpu.memory_space<vmem>>, vector<8x16xbf16>
    %cst_25 = arith.constant dense<0.000000e+00> : vector<8x16xf32>
    %49 = tpu.matmul %47, %48, %cst_25 {dimension_numbers = #tpu.dot_dimension_numbers<[1], [0], [0], [1], [0, 0, 1, 1], [], []>} : vector<8x8xbf16>, vector<8x16xbf16>, vector<8x16xf32> -> vector<8x16xf32>
    %50 = arith.truncf %49 : vector<8x16xf32> to vector<8x16xbf16>
    %51 = tpu.concatenate %30, %50 in 1 : vector<8x16xbf16>, vector<8x16xbf16> -> vector<8x32xbf16>
    %c0_26 = arith.constant 0 : index
    %c0_27 = arith.constant 0 : index
    %52 = vector.load %arg5[%c0_26, %c0_27] : memref<32x32xbf16, #tpu.memory_space<vmem>>, vector<32x32xbf16>
    %cst_28 = arith.constant dense<0.000000e+00> : vector<8x32xf32>
    %53 = tpu.matmul %51, %52, %cst_28 {dimension_numbers = #tpu.dot_dimension_numbers<[1], [0], [0], [1], [0, 0, 1, 1], [], []>} : vector<8x32xbf16>, vector<32x32xbf16>, vector<8x32xf32> -> vector<8x32xf32>
    %c0_29 = arith.constant 0 : index
    %c0_30 = arith.constant 0 : index
    %54 = vector.load %arg6[%c0_29, %c0_30] : memref<1x32xf32, #tpu.memory_space<vmem>>, vector<1x32xf32>
    %55 = vector.broadcast %54 : vector<1x32xf32> to vector<8x32xf32>
    %56 = arith.addf %53, %55 : vector<8x32xf32>
    %c0_31 = arith.constant 0 : index
    %c0_32 = arith.constant 0 : index
    %c0_33 = arith.constant 0 : index
    %57 = vector.load %arg7[%c0_31, %c0_32, %c0_33] : memref<1x8x32xf32, #tpu.memory_space<vmem>>, vector<1x8x32xf32>
    %58 = vector.shape_cast %57 : vector<1x8x32xf32> to vector<8x32xf32>
    %59 = vector.shape_cast %56 : vector<8x32xf32> to vector<1x8x32xf32>
    tpu.vector_store %arg7[%c0_31, %c0_32, %c0_33], %59 {strides = array<i32>} : memref<1x8x32xf32, #tpu.memory_space<vmem>>, vector<1x8x32xf32>,
    return
  }
  func.func @transform_0(%arg0: i32, %arg1: i32) -> (i32, i32, i32) {
    %c0_i32 = arith.constant 0 : i32
    %c0_i32_0 = arith.constant 0 : i32
    %c0_i32_1 = arith.constant 0 : i32
    return %arg0, %c0_i32, %c0_i32_0 : i32, i32, i32
  }
  func.func @transform_1(%arg0: i32, %arg1: i32) -> (i32, i32) {
    %c0_i32 = arith.constant 0 : i32
    %c0_i32_0 = arith.constant 0 : i32
    %c0_i32_1 = arith.constant 0 : i32
    return %c0_i32, %c0_i32_0 : i32, i32
  }
  func.func @transform_2(%arg0: i32, %arg1: i32) -> (i32, i32) {
    %c0_i32 = arith.constant 0 : i32
    %c0_i32_0 = arith.constant 0 : i32
    %c0_i32_1 = arith.constant 0 : i32
    return %c0_i32, %c0_i32_0 : i32, i32
  }
  func.func @transform_3(%arg0: i32, %arg1: i32) -> (i32, i32) {
    %c0_i32 = arith.constant 0 : i32
    %c0_i32_0 = arith.constant 0 : i32
    %c0_i32_1 = arith.constant 0 : i32
    return %c0_i32, %c0_i32_0 : i32, i32
  }
  func.func @transform_4(%arg0: i32, %arg1: i32) -> (i32, i32) {
    %c0_i32 = arith.constant 0 : i32
    %c0_i32_0 = arith.constant 0 : i32
    %c0_i32_1 = arith.constant 0 : i32
    return %c0_i32, %c0_i32_0 : i32, i32
  }
  func.func @transform_5(%arg0: i32, %arg1: i32) -> (i32, i32, i32) {
    %c0_i32 = arith.constant 0 : i32
    %c0_i32_0 = arith.constant 0 : i32
    return %arg0, %arg1, %c0_i32 : i32, i32, i32
  }
  func.func @transform_6(%arg0: i32, %arg1: i32) -> (i32, i32, i32, i32) {
    %c0_i32 = arith.constant 0 : i32
    %c0_i32_0 = arith.constant 0 : i32
    %c0_i32_1 = arith.constant 0 : i32
    return %arg0, %c0_i32, %arg1, %c0_i32_0 : i32, i32, i32, i32
  }
}

module attributes {stable_mosaic.version = 11 : i64} {
  func.func @_attention_kernel(%arg0: i32, %arg1: i32, %arg2: memref<1x8x32xbf16, #tpu.memory_space<vmem>>, %arg3: memref<32x32xbf16, #tpu.memory_space<vmem>>, %arg4: memref<32x64xbf16, #tpu.memory_space<vmem>>, %arg5: memref<32x32xbf16, #tpu.memory_space<vmem>>, %arg6: memref<1x32xf32, #tpu.memory_space<vmem>>, %arg7: memref<1x8x32xf32, #tpu.memory_space<vmem>>, %arg8: memref<1x2x8x8xf32, #tpu.memory_space<vmem>>, %arg9: memref<8x32xbf16, #tpu.memory_space<vmem>>, %arg10: memref<8x32xbf16, #tpu.memory_space<vmem>>) attributes {dimension_semantics = [#tpu.dimension_semantics<parallel>, #tpu.dimension_semantics<arbitrary>], iteration_bounds = array<i64: 2, 1>, scalar_prefetch = 0 : i64, scratch_operands = 2 : i64, tpu.core_type = #tpu.core_type<tc>, window_params = [{transform_indices = @transform_0, window_bounds = array<i64: 1, 8, 32>}, {pipeline_mode = #tpu.pipeline_mode<synchronous>, transform_indices = @transform_1, window_bounds = array<i64: 32, 32>}, {pipeline_mode = #tpu.pipeline_mode<synchronous>, transform_indices = @transform_2, window_bounds = array<i64: 32, 64>}, {pipeline_mode = #tpu.pipeline_mode<synchronous>, transform_indices = @transform_3, window_bounds = array<i64: 32, 32>}, {pipeline_mode = #tpu.pipeline_mode<synchronous>, transform_indices = @transform_4, window_bounds = array<i64: 1, 32>}, {transform_indices = @transform_5, window_bounds = array<i64: 1, 8, 32>}, {transform_indices = @transform_6, window_bounds = array<i64: 1, 2, 8, 8>}]} {
    %c0_i32 = arith.constant 0 : i32
    %0 = arith.cmpi eq, %arg1, %c0_i32 : i32
    %1 = arith.extui %0 : i1 to i32
    %c0_i32_0 = arith.constant 0 : i32
    %2 = arith.cmpi ne, %1, %c0_i32_0 : i32
    scf.if %2 {
      %c0_34 = arith.constant 0 : index
      %c0_35 = arith.constant 0 : index
      %c0_36 = arith.constant 0 : index
      %60 = vector.load %arg2[%c0_34, %c0_35, %c0_36] : memref<1x8x32xbf16, #tpu.memory_space<vmem>>, vector<1x8x32xbf16>
      %61 = vector.shape_cast %60 : vector<1x8x32xbf16> to vector<8x32xbf16>
      %c0_37 = arith.constant 0 : index
      %c0_38 = arith.constant 0 : index
      %62 = vector.load %arg4[%c0_37, %c0_38] : memref<32x64xbf16, #tpu.memory_space<vmem>>, vector<32x64xbf16>
      %cst_39 = arith.constant dense<0.000000e+00> : vector<8x64xf32>
      %63 = tpu.matmul %61, %62, %cst_39 {dimension_numbers = #tpu.dot_dimension_numbers<[1], [0], [0], [1], [0, 0, 1, 1], [], []>} : vector<8x32xbf16>, vector<32x64xbf16>, vector<8x64xf32> -> vector<8x64xf32>
      %64 = vector.extract_strided_slice %63 {offsets = [0, 0], sizes = [8, 32], strides = [1, 1]} : vector<8x64xf32> to vector<8x32xf32>
      %65 = arith.truncf %64 : vector<8x32xf32> to vector<8x32xbf16>
      %c0_40 = arith.constant 0 : index
      %c0_41 = arith.constant 0 : index
      %66 = vector.load %arg9[%c0_40, %c0_41] : memref<8x32xbf16, #tpu.memory_space<vmem>>, vector<8x32xbf16>
      tpu.vector_store %arg9[%c0_40, %c0_41], %65 {strides = array<i32>} : memref<8x32xbf16, #tpu.memory_space<vmem>>, vector<8x32xbf16>,
      %67 = vector.extract_strided_slice %63 {offsets = [0, 32], sizes = [8, 32], strides = [1, 1]} : vector<8x64xf32> to vector<8x32xf32>
      %68 = arith.truncf %67 : vector<8x32xf32> to vector<8x32xbf16>
      %c0_42 = arith.constant 0 : index
      %c0_43 = arith.constant 0 : index
      %69 = vector.load %arg10[%c0_42, %c0_43] : memref<8x32xbf16, #tpu.memory_space<vmem>>, vector<8x32xbf16>
      tpu.vector_store %arg10[%c0_42, %c0_43], %68 {strides = array<i32>} : memref<8x32xbf16, #tpu.memory_space<vmem>>, vector<8x32xbf16>,
    } else {
    }
    %c8_i32 = arith.constant 8 : i32
    %3 = arith.muli %arg1, %c8_i32 : i32
    %4 = tpu.assume_multiple %3, 8 : i32
    %c0 = arith.constant 0 : index
    %5 = arith.index_cast %4 : i32 to index
    %c0_1 = arith.constant 0 : index
    %6 = vector.load %arg2[%c0, %5, %c0_1] : memref<1x8x32xbf16, #tpu.memory_space<vmem>>, vector<1x8x32xbf16>
    %7 = vector.shape_cast %6 : vector<1x8x32xbf16> to vector<8x32xbf16>
    %c0_2 = arith.constant 0 : index
    %c0_3 = arith.constant 0 : index
    %8 = vector.load %arg3[%c0_2, %c0_3] : memref<32x32xbf16, #tpu.memory_space<vmem>>, vector<32x32xbf16>
    %cst = arith.constant dense<0.000000e+00> : vector<8x32xf32>
    %9 = tpu.matmul %7, %8, %cst {dimension_numbers = #tpu.dot_dimension_numbers<[1], [0], [0], [1], [0, 0, 1, 1], [], []>} : vector<8x32xbf16>, vector<32x32xbf16>, vector<8x32xf32> -> vector<8x32xf32>
    %10 = arith.truncf %9 : vector<8x32xf32> to vector<8x32xbf16>
    %11 = vector.extract_strided_slice %10 {offsets = [0, 0], sizes = [8, 16], strides = [1, 1]} : vector<8x32xbf16> to vector<8x16xbf16>
    %c0_4 = arith.constant 0 : index
    %c0_5 = arith.constant 0 : index
    %12 = vector.load %arg9[%c0_4, %c0_5] : memref<8x32xbf16, #tpu.memory_space<vmem>>, vector<8x16xbf16>
    %cst_6 = arith.constant dense<0.000000e+00> : vector<8x8xf32>
    %13 = tpu.matmul %11, %12, %cst_6 {dimension_numbers = #tpu.dot_dimension_numbers<[1], [1], [0], [0], [0, 0, 1, 0], [], []>} : vector<8x16xbf16>, vector<8x16xbf16>, vector<8x8xf32> -> vector<8x8xf32>
    %cst_7 = arith.constant dense<0xFF800000> : vector<8xf32>
    %14 = vector.multi_reduction <maximumf>, %13, %cst_7 [1] : vector<8x8xf32> to vector<8xf32>
    %15 = vector.shape_cast %14 : vector<8xf32> to vector<8x1xf32>
    %16 = vector.broadcast %15 : vector<8x1xf32> to vector<8x8xf32>
    %17 = arith.subf %13, %16 : vector<8x8xf32>
    %18 = math.exp %17 : vector<8x8xf32>
    %cst_8 = arith.constant dense<0.000000e+00> : vector<8xf32>
    %19 = vector.multi_reduction <add>, %18, %cst_8 [1] : vector<8x8xf32> to vector<8xf32>
    %20 = vector.shape_cast %19 : vector<8xf32> to vector<8x1xf32>
    %21 = tpu.reciprocal %20 {approx = true} : vector<8x1xf32> -> vector<8x1xf32>
    %22 = vector.broadcast %21 : vector<8x1xf32> to vector<8x8xf32>
    %23 = arith.mulf %18, %22 : vector<8x8xf32>
    %c0_9 = arith.constant 0 : index
    %c0_10 = arith.constant 0 : index
    %c0_11 = arith.constant 0 : index
    %c0_12 = arith.constant 0 : index
    %24 = vector.load %arg8[%c0_9, %c0_10, %c0_11, %c0_12] : memref<1x2x8x8xf32, #tpu.memory_space<vmem>>, vector<1x1x8x8xf32>
    %25 = vector.shape_cast %24 : vector<1x1x8x8xf32> to vector<8x8xf32>
    %26 = vector.shape_cast %23 : vector<8x8xf32> to vector<1x1x8x8xf32>
    tpu.vector_store %arg8[%c0_9, %c0_10, %c0_11, %c0_12], %26 {strides = array<i32>} : memref<1x2x8x8xf32, #tpu.memory_space<vmem>>, vector<1x1x8x8xf32>,
    %27 = arith.truncf %23 : vector<8x8xf32> to vector<8x8xbf16>
    %c0_13 = arith.constant 0 : index
    %c0_14 = arith.constant 0 : index
    %28 = vector.load %arg10[%c0_13, %c0_14] : memref<8x32xbf16, #tpu.memory_space<vmem>>, vector<8x16xbf16>
    %cst_15 = arith.constant dense<0.000000e+00> : vector<8x16xf32>
    %29 = tpu.matmul %27, %28, %cst_15 {dimension_numbers = #tpu.dot_dimension_numbers<[1], [0], [0], [1], [0, 0, 1, 1], [], []>} : vector<8x8xbf16>, vector<8x16xbf16>, vector<8x16xf32> -> vector<8x16xf32>
    %30 = arith.truncf %29 : vector<8x16xf32> to vector<8x16xbf16>
    %31 = vector.extract_strided_slice %10 {offsets = [0, 16], sizes = [8, 16], strides = [1, 1]} : vector<8x32xbf16> to vector<8x16xbf16>
    %c0_16 = arith.constant 0 : index
    %c16 = arith.constant 16 : index
    %32 = vector.load %arg9[%c0_16, %c16] : memref<8x32xbf16, #tpu.memory_space<vmem>>, vector<8x16xbf16>
    %cst_17 = arith.constant dense<0.000000e+00> : vector<8x8xf32>
    %33 = tpu.matmul %31, %32, %cst_17 {dimension_numbers = #tpu.dot_dimension_numbers<[1], [1], [0], [0], [0, 0, 1, 0], [], []>} : vector<8x16xbf16>, vector<8x16xbf16>, vector<8x8xf32> -> vector<8x8xf32>
    %cst_18 = arith.constant dense<0xFF800000> : vector<8xf32>
    %34 = vector.multi_reduction <maximumf>, %33, %cst_18 [1] : vector<8x8xf32> to vector<8xf32>
    %35 = vector.shape_cast %34 : vector<8xf32> to vector<8x1xf32>
    %36 = vector.broadcast %35 : vector<8x1xf32> to vector<8x8xf32>
    %37 = arith.subf %33, %36 : vector<8x8xf32>
    %38 = math.exp %37 : vector<8x8xf32>
    %cst_19 = arith.constant dense<0.000000e+00> : vector<8xf32>
    %39 = vector.multi_reduction <add>, %38, %cst_19 [1] : vector<8x8xf32> to vector<8xf32>
    %40 = vector.shape_cast %39 : vector<8xf32> to vector<8x1xf32>
    %41 = tpu.reciprocal %40 {approx = true} : vector<8x1xf32> -> vector<8x1xf32>
    %42 = vector.broadcast %41 : vector<8x1xf32> to vector<8x8xf32>
    %43 = arith.mulf %38, %42 : vector<8x8xf32>
    %c0_20 = arith.constant 0 : index
    %c1 = arith.constant 1 : index
    %c0_21 = arith.constant 0 : index
    %c0_22 = arith.constant 0 : index
    %44 = vector.load %arg8[%c0_20, %c1, %c0_21, %c0_22] : memref<1x2x8x8xf32, #tpu.memory_space<vmem>>, vector<1x1x8x8xf32>
    %45 = vector.shape_cast %44 : vector<1x1x8x8xf32> to vector<8x8xf32>
    %46 = vector.shape_cast %43 : vector<8x8xf32> to vector<1x1x8x8xf32>
    tpu.vector_store %arg8[%c0_20, %c1, %c0_21, %c0_22], %46 {strides = array<i32>} : memref<1x2x8x8xf32, #tpu.memory_space<vmem>>, vector<1x1x8x8xf32>,
    %47 = arith.truncf %43 : vector<8x8xf32> to vector<8x8xbf16>
    %c0_23 = arith.constant 0 : index
    %c16_24 = arith.constant 16 : index
    %48 = vector.load %arg10[%c0_23, %c16_24] : memref<8x32xbf16, #tpu.memory_space<vmem>>, vector<8x16xbf16>
    %cst_25 = arith.constant dense<0.000000e+00> : vector<8x16xf32>
    %49 = tpu.matmul %47, %48, %cst_25 {dimension_numbers = #tpu.dot_dimension_numbers<[1], [0], [0], [1], [0, 0, 1, 1], [], []>} : vector<8x8xbf16>, vector<8x16xbf16>, vector<8x16xf32> -> vector<8x16xf32>
    %50 = arith.truncf %49 : vector<8x16xf32> to vector<8x16xbf16>
    %51 = tpu.concatenate %30, %50 in 1 : vector<8x16xbf16>, vector<8x16xbf16> -> vector<8x32xbf16>
    %c0_26 = arith.constant 0 : index
    %c0_27 = arith.constant 0 : index
    %52 = vector.load %arg5[%c0_26, %c0_27] : memref<32x32xbf16, #tpu.memory_space<vmem>>, vector<32x32xbf16>
    %cst_28 = arith.constant dense<0.000000e+00> : vector<8x32xf32>
    %53 = tpu.matmul %51, %52, %cst_28 {dimension_numbers = #tpu.dot_dimension_numbers<[1], [0], [0], [1], [0, 0, 1, 1], [], []>} : vector<8x32xbf16>, vector<32x32xbf16>, vector<8x32xf32> -> vector<8x32xf32>
    %c0_29 = arith.constant 0 : index
    %c0_30 = arith.constant 0 : index
    %54 = vector.load %arg6[%c0_29, %c0_30] : memref<1x32xf32, #tpu.memory_space<vmem>>, vector<1x32xf32>
    %55 = vector.broadcast %54 : vector<1x32xf32> to vector<8x32xf32>
    %56 = arith.addf %53, %55 : vector<8x32xf32>
    %c0_31 = arith.constant 0 : index
    %c0_32 = arith.constant 0 : index
    %c0_33 = arith.constant 0 : index
    %57 = vector.load %arg7[%c0_31, %c0_32, %c0_33] : memref<1x8x32xf32, #tpu.memory_space<vmem>>, vector<1x8x32xf32>
    %58 = vector.shape_cast %57 : vector<1x8x32xf32> to vector<8x32xf32>
    %59 = vector.shape_cast %56 : vector<8x32xf32> to vector<1x8x32xf32>
    tpu.vector_store %arg7[%c0_31, %c0_32, %c0_33], %59 {strides = array<i32>} : memref<1x8x32xf32, #tpu.memory_space<vmem>>, vector<1x8x32xf32>,
    return
  }
  func.func @transform_0(%arg0: i32, %arg1: i32) -> (i32, i32, i32) {
    %c0_i32 = arith.constant 0 : i32
    %c0_i32_0 = arith.constant 0 : i32
    %c0_i32_1 = arith.constant 0 : i32
    return %arg0, %c0_i32, %c0_i32_0 : i32, i32, i32
  }
  func.func @transform_1(%arg0: i32, %arg1: i32) -> (i32, i32) {
    %c0_i32 = arith.constant 0 : i32
    %c0_i32_0 = arith.constant 0 : i32
    %c0_i32_1 = arith.constant 0 : i32
    return %c0_i32, %c0_i32_0 : i32, i32
  }
  func.func @transform_2(%arg0: i32, %arg1: i32) -> (i32, i32) {
    %c0_i32 = arith.constant 0 : i32
    %c0_i32_0 = arith.constant 0 : i32
    %c0_i32_1 = arith.constant 0 : i32
    return %c0_i32, %c0_i32_0 : i32, i32
  }
  func.func @transform_3(%arg0: i32, %arg1: i32) -> (i32, i32) {
    %c0_i32 = arith.constant 0 : i32
    %c0_i32_0 = arith.constant 0 : i32
    %c0_i32_1 = arith.constant 0 : i32
    return %c0_i32, %c0_i32_0 : i32, i32
  }
  func.func @transform_4(%arg0: i32, %arg1: i32) -> (i32, i32) {
    %c0_i32 = arith.constant 0 : i32
    %c0_i32_0 = arith.constant 0 : i32
    %c0_i32_1 = arith.constant 0 : i32
    return %c0_i32, %c0_i32_0 : i32, i32
  }
  func.func @transform_5(%arg0: i32, %arg1: i32) -> (i32, i32, i32) {
    %c0_i32 = arith.constant 0 : i32
    %c0_i32_0 = arith.constant 0 : i32
    return %arg0, %arg1, %c0_i32 : i32, i32, i32
  }
  func.func @transform_6(%arg0: i32, %arg1: i32) -> (i32, i32, i32, i32) {
    %c0_i32 = arith.constant 0 : i32
    %c0_i32_0 = arith.constant 0 : i32
    %c0_i32_1 = arith.constant 0 : i32
    return %arg0, %c0_i32, %arg1, %c0_i32_0 : i32, i32, i32, i32
  }
}

</mosaic_0001>

<bundles_post_ra>
// kernel: tpu_custom_call.1
= control target key start
LH: loop header
LB: loop body
LE: loop exit
PB: predicated region body
PF: predicated region fallthrough
CT: control target
= control target key end

     0   :  { %s1470_s0 = inlined_call_operand.hbm [shape: bf16[2,8,32], index: 0, kind: input, shape index: {}]   ;;  %s1471_s1 = inlined_call_operand.hbm [shape: bf16[32,32], index: 1, kind: input, shape index: {}]   ;;  %s1472_s2 = inlined_call_operand.hbm [shape: bf16[32,64], index: 2, kind: input, shape index: {}]   ;;  %s1473_s3 = inlined_call_operand.hbm [shape: bf16[32,32], index: 3, kind: input, shape index: {}]   ;;  %s1474_s4 = inlined_call_operand.vmem [shape: f32[1,32], index: 4, kind: input, shape index: {}]   ;;  %s1475_s5 = inlined_call_operand.hbm [shape: f32[2,8,32], index: 5, kind: output, shape index: {0}]   ;;  %s1476_s6 = inlined_call_operand.hbm [shape: f32[2,2,8,8], index: 6, kind: output, shape index: {1}]  }
   0x1   :  { %1477 = sst [smem:[#allocation20_spill]] %s1470_s0 }
   0x2   :  { %1478 = sst [smem:[#allocation21_spill]] %s1471_s1 }
   0x3   :  { %12 = vsyncpa [#allocation5], 0 }
   0x4   :  { %14 = vsyncpa [#allocation5 + $0x1], 0 }
   0x5   :  { %15 = vsyncpa [#allocation8], 0 }
   0x6   :  { %16 = vsyncpa [#allocation11], 0 }
   0x7   :  { %17 = vsyncpa [#allocation6], 0 }
   0x8   :  { %19 = vsyncpa [#allocation6 + $0x1], 0 }
   0x9   :  { %20 = vsyncpa [#allocation14], 0 }
   0xa   :  { %22 = vsyncpa [#allocation14 + $0x1], 0  ;;  %s1254_s21 = smov 0   ;;  %s1256_s22 = smov 0  }
   0xb   :  { %s1258_s23 = smov 0   ;;  %s1260_s24 = smov 0  }
   0xc   :  { %s1262_s25 = smov 0   ;;  %s1264_s26 = smov 0  }
   0xd LB: > { %s789_s27 = sadd.s32 4294967295, %s1207_s26   ;;  %p791_p0 = scmp.ge.s32.totalorder %s1207_s26, 1  ;;  %s1207_s26 = sphi %s1264_s26, %s28_s26   ;;  %s1203_s25 = sphi %s1262_s25, %s1492_s25   ;;  %s1199_s24 = sphi %s1260_s24, %s1491_s24   ;;  %s1195_s23 = sphi %s1258_s23, %s1490_s23   ;;  %s1191_s22 = sphi %s1256_s22, %s1489_s22   ;;  %s1187_s21 = sphi %s1254_s21, %s1488_s21  }
   0xe   : > { %p1288_p1 = scmp.eq.s32.totalorder %s789_s27, 0  ;;  %p211_p2 = scmp.lt.s32.totalorder %s1207_s26, 3 }
   0xf   : > { %s1480_s1 = sld [smem:[#allocation21_spill]]  ;;  %s1209_s9 = smov [#allocation7]  }
  0x10   : > { %p1296_p3 = pnand %p791_p0, %p211_p2  ;;  %s224_s10 = sshll.u32 %s1209_s9, 4  ;;  %s225_s10 = int_to_ptr.vmem [resolvable:$true] %s224_s10 }
  0x11   : > { %p795_p6 = scmp.ge.s32.totalorder %s1207_s26, 2  ;;  %s236_s14 = sshll.u32 %s1472_s2, 4  ;;  %s237_s14 = int_to_ptr.hbm [resolvable:$true] %s236_s14 }
  0x12   : > { %p869_p4 = pneg %p1296_p3  ;;  %s1210_s15 = smov 64  }
  0x13   : > { %s1211_s16 = smov 4   ;;  %s1212_s17 = smov [#allocation9]  }
  0x14   : > { %p1304_p5 = pnand %p869_p4, %p1288_p1  ;;  %s238_s18 = sshll.u32 %s1212_s17, 4  ;;  %s239_s18 = int_to_ptr.vmem [resolvable:$true] %s238_s18 }
  0x15   : > { %s222_s7 = sshll.u32 %s1480_s1, 4  ;;  %s250_s29 = sshll.u32 %s1473_s3, 4  ;;  %s223_s7 = int_to_ptr.hbm [resolvable:$true] %s222_s7  ;;  %s251_s29 = int_to_ptr.hbm [resolvable:$true] %s250_s29 }
  0x16   : > { %872 = dma.hbm_to_vmem [thread:$0]  (!%p1304_p5), %s223_s7, 256, %s225_s10, [#allocation8], %s1210_s15, %s1210_s15, %s1211_s16  }
  0x17   : > { %875 = dma.hbm_to_vmem [thread:$0]  (!%p1304_p5), %s237_s14, 256, %s239_s18, [#allocation8], %s1210_s15, %s1210_s15, %s1211_s16  }
  0x18   : > { %s1213_s30 = smov [#allocation10]   ;;  %s790_s7 = sadd.s32 4294967294, %s1207_s26  }
  0x19   : > { %s252_s9 = sshll.u32 %s1213_s30, 4  ;;  %s40_s10 = sadd.s32 1, %s1203_s25  ;;  %s253_s9 = int_to_ptr.vmem [resolvable:$true] %s252_s9 }
  0x1a   : > { %878 = dma.hbm_to_vmem [thread:$0]  (!%p1304_p5), %s251_s29, 256, %s253_s9, [#allocation11], %s1210_s15, %s1210_s15, %s1211_s16  }
  0x1b   : > { %s47_s12 = sadd.s32 1, %s1195_s23  ;;  %p42_p7 = scmp.ge.s32.totalorder %s40_s10, 2 }
  0x1c   : > { %p54_p8 = scmp.ne.s32.totalorder %s1195_s23, %s1191_s22  ;;  %p55_p9 = scmp.eq.s32.totalorder %s1207_s26, 0 }
  0x1d   : > { %p60_p10 = scmp.ne.s32.totalorder %s1191_s22, %s1187_s21  ;;  %s1494_s10 = smov (%p42_p7, %s40_s10), 0 }
  0x1e   : > { %p1331_p11 = por %p55_p9, %p54_p8  ;;  %s44_s14 = ssub.s32 %s1203_s25, %s1494_s10 }
  0x1f   : > { %p1337_p12 = por %p1288_p1, %p60_p10  ;;  %p170_p13 = scmp.eq.s32.totalorder %s789_s27, 1 }
  0x20   : > { %p45_p0 = scmp.eq.s32.totalorder %s44_s14, 0  ;;  %p176_p2 = scmp.eq.s32.totalorder %s790_s7, 1 }
  0x21   : > { %p1345_p4 = por %p170_p13, %p54_p8  ;;  %p893_p5 = scmp.lt.s32.totalorder %s1207_s26, 2 }
  0x22   : > { %s1351_s16 = scalar_select %p45_p0, %s1195_s23, %s47_s12  }
  0x23   : > { %p1353_p7 = por %p176_p2, %p60_p10  ;;  %s269_s18 = sand.u32 1, %s1195_s23  }
  0x24   : > { %s796_s19 = sshll.u32 %s269_s18, 2  ;;  %s797_s20 = sshll.u32 %s1203_s25, 2 }
  0x25   : > { %s1487_s0 = sld [smem:[#allocation20_spill]]  ;;  %s273_s9 = scalar_lea.vmem [#allocation4], %s796_s19 }
  0x26   : > { %s281_s7 = sshll.u32 %s273_s9, 4  ;;  %p880_p8 = pnand %p893_p5, %p1331_p11  ;;  %s282_s7 = int_to_ptr.vmem [resolvable:$true] %s281_s7 }
  0x27   : > { %s270_s12 = scalar_lea.sflag [#allocation5], %s269_s18  ;;  %s1367_s1 = sand.u32 (!%p1296_p3), 1, %s1191_s22  }
  0x28   : > { %s799_s29 = sshll.u32 (!%p1296_p3), %s1367_s1, 2 }
  0x29   : > { %290 = sbr.rel (%p1296_p3) target bundleno = 1382 (0x566), region = 40  ;;  %s296_s19 = scalar_lea.vmem (!%p1296_p3), [#allocation4], %s799_s29 }
  0x2b   : > { %s277_s27 = scalar_lea.hbm %s1487_s0, %s797_s20  ;;  %s293_s20 = scalar_lea.sflag (!%p1296_p3), [#allocation5], %s1367_s1 }
  0x2c   : > { %s279_s14 = sshll.u32 %s277_s27, 4  ;;  %s280_s14 = int_to_ptr.hbm [resolvable:$true] %s279_s14 }
  0x2d   : > { %882 = dma.hbm_to_vmem [thread:$0]  (!%p880_p8), %s280_s14, 64, %s282_s7, %s270_s12  }
  0x2e   : > { %1166 = dma.done.wait (%p1337_p12), %s293_s20, 64  }
  0x2f   : > { %1168 = vsyncadd (%p1337_p12), %s293_s20, 4294967232 }
  0x30   : > { %1170 = dma.done.wait (%p1288_p1), [#allocation8], 512  }
  0x31   : > { %1172 = vsyncadd (%p1288_p1), [#allocation8], 4294966784 }
  0x32   : > { %1174 = dma.done.wait (%p1288_p1), [#allocation11], 256  }
  0x33   : > { %1176 = vsyncadd (%p1288_p1), [#allocation11], 4294967040  ;;  %v845_v0 = vld [vmem:[#allocation9 + $0x8] sm:$0xff]  ;;  %v847_v1 = vld [vmem:[#allocation7 + $0x8] sm:$0xff]  ;;  %vm368_vm0 = vcmask 261120   ;;  %vm386_vm1 = vcmask 257024  }
  0x34   : > { %378 = vmatpush.bf16.msra.mxu0 %v845_v0  ;;  %v844_v2 = vld [vmem:[#allocation9] sm:$0xff]  ;;  %425 = vmatpush.bf16.msra.mxu1 %v847_v1  ;;  %v846_v3 = vld [vmem:[#allocation7] sm:$0xff]  ;;  %v351_v4 = vld [vmem:[%s296_s19] sm:$0xf]  ;;  %vm434_vm2 = vcmask 130048   ;;  %s1214_s28 = smov 112  }
  0x35   : > { %v398_v5 = vld [vmem:[%s296_s19] sm:$0xf]  ;;  %vm454_vm3 = vcmask 64512   ;;  %s1215_s8 = smov 96   ;;  %vm472_vm4 = vcmask 1043456   ;;  %s804_s13 = sshll.u32 %s1367_s1, 4 }
  0x36   : > { %s1396_s11 = scalar_lea.vmem [#allocation13], %s804_s13  ;;  %v849_v56 = vld [vmem:[#allocation10 + $0x8] sm:$0xff]  ;;  %v848_v57 = vld [vmem:[#allocation10] sm:$0xff]  ;;  %s1216_s18 = smov 16  }
  0x37   : > { %s850_s30 = sshll.u32 %s1199_s24, 4  ;;  %s638_s14 = sshll.u32 %s1396_s11, 4  ;;  %s639_s14 = int_to_ptr.vmem [resolvable:$true] %s638_s14 }
  0x38   : > { %379 = vmatpush.bf16.msra.mxu0 %v844_v2  ;;  %426 = vmatpush.bf16.msra.mxu1 %v846_v3  ;;  %s637_s7 = scalar_lea.hbm %s1476_s6, %s850_s30  ;;  %s610_s29 = scalar_lea.sflag [#allocation14], %s1367_s1 }
  0x39   : > { %s640_s12 = sshll.u32 %s637_s7, 4  ;;  %s1105_s13 = scalar_lea.hbm %s1476_s6, 32  ;;  %s641_s12 = int_to_ptr.hbm [resolvable:$true] %s640_s12 }
  0x3a   : > { %s1099_s20 = sshra.s32 %s641_s12, 4  ;;  %s1100_s20 = int_to_ptr.hbm [resolvable:$true] %s1099_s20 }
  0x3b   : > { %813 = vmatmul.msk.bf16.vlgmr.msra.gmra.mxu0 %vm368_vm0, %v351_v4  ;;  %822 = vmatmul.msk.bf16.vlgmr.msra.gmra.mxu1 %vm368_vm0, %v398_v5  ;;  %s1101_s19 = scalar_lea.hbm %s1100_s20, 16  ;;  %p1106_p10 = scmp.lt.s32.totalorder %s1100_s20, %s1476_s6 }
  0x3c   : > { %596 = vmatpush.bf16.msrb.mxu1 %v849_v56  ;;  %p1102_p1 = scmp.ne.s32.totalorder %s1100_s20, %s1101_s19  ;;  %p1107_p11 = scmp.lt.s32.totalorder %s1105_s13, %s1101_s19 }
  0x3e   : > { %p1103_p3 = pnand %p1102_p1, %p1345_p4  ;;  %p1108_p12 = por %p1107_p11, %p1106_p10 }
  0x40   : > { %597 = vmatpush.bf16.msrb.mxu1 %v848_v57  ;;  %p1104_p9 = pneg %p1103_p3 }
  0x42   : > { %p1109_p13 = pnand %p1108_p12, %p1104_p9 }
  0xb8   : > { %v381_v6 = vpop.f32.mrf.mxu0  ;;  %v428_v8 = vpop.f32.mrf.mxu1 }
  0xb9   : > { %v385_v7 = vpack.c.bf16 %v381_v6, %v381_v6  ;;  %v432_v9 = vpack.c.bf16 %v428_v8, %v428_v8 }
  0xbb   : > { %387 = vst.msk [vmem:[#allocation2] sm:$0xf] %vm386_vm1, %v385_v7  ;;  %v492_v10 = vunpack.c.l.b16 %v432_v9 }
  0xbd   : > { %v493_v11 = vpack.c.b16 %v492_v10, %v492_v10 }
  0xbf   : > { %494 = vrot.lane.b32.xlu2 %v493_v11, %s1214_s28 }
  0xc0   : > { %v383_v12 = vpop.f32.mrf.mxu0  ;;  %v430_v13 = vpop.f32.mrf.mxu1 }
  0xc2   : > { %v433_v14 = vld [vmem:[#allocation2] sm:$0xf] }
  0xc3   : > { %v439_v15 = vsel %vm434_vm2, %v433_v14, 0  ;;  %v490_v27 = vld [vmem:[#allocation2] sm:$0xf] }
  0xc4   : > { %448 = vmatpush.bf16.xpose.msra.mxu2 %v439_v15  ;;  %v497_v28 = vunpack.c.l.b16 %v490_v27 }
  0xc6   : > { %v498_v29 = vpack.c.b16 %v497_v28, %v497_v28 }
  0xcb   : > { %823 = vmatmul.msk.bf16.vlgmr.msra.gmra.mxu2 %vm434_vm2, %v432_v9 }
 0x119   : > { %v495_v39 = vpop.permute.xlu2 %494 }
 0x14e   : > { %v450_v16 = vpop.f32.mrf.mxu2 }
 0x14f   : > { %v455_v17 = vsel %vm454_vm3, %v450_v16, -inf }
 0x150   : > { %456 = vmax.xlane.f32.xlu0 %v455_v17 }
 0x156   : > { %v452_v18 = vpop.f32.mrf.mxu2 }
 0x164   : > { %389 = vrot.lane.b32.xlu0 %v385_v7, %s1215_s8 }
 0x1c3   : > { %v457_v19 = vpop.xlane.xlu0 %456 }
 0x1c4   : > { %v458_v20 = vsub.f32 %v450_v16, %v457_v19 }
 0x1c6   : > { %v459_v21 = vmul.f32 1.442695, %v458_v20 }
 0x1c8   : > { %957 = vpow2.f32 %v459_v21 }
 0x1ce   : > { %v958_v22 = vpop.eup %957 }
 0x1cf   : > { %v461_v23 = vsel %vm454_vm3, %v958_v22, 0.0 }
 0x1d0   : > { %462 = vadd.xlane.f32.xlu1 %v461_v23 }
 0x1d6   : > { %v390_v24 = vpop.permute.xlu0 %389 }
 0x1d7   : > { %392 = vst.msk [vmem:[#allocation3] sm:$0xf] %vm386_vm1, %v390_v24 }
 0x1de   : > { %v468_v25 = vld [vmem:[#allocation3] sm:$0xf] }
 0x1df   : > { %v474_v26 = vsel %vm472_vm4, %v468_v25, 0  ;;  %v534_v30 = vld [vmem:[#allocation3] sm:$0xf] }
 0x1e0   : > { %483 = vmatpush.bf16.msra.mxu3 %v474_v26  ;;  %v536_v31 = vunpack.c.l.b16 %v534_v30 }
 0x1e2   : > { %v537_v32 = vpack.c.b16 %v536_v31, %v536_v31 }
 0x1e9   : > { %499 = vrot.lane.b32.xlu1 %v498_v29, %s1214_s28 }
 0x1f1   : > { %538 = vrot.lane.b32.xlu1 %v537_v32, %s1214_s28 }
 0x243   : > { %v463_v33 = vpop.xlane.xlu1 %462 }
 0x244   : > { %959 = vrcp.f32 %v463_v33 }
 0x24a   : > { %v960_v34 = vpop.eup %959 }
 0x24b   : > { %v465_v35 = vmul.f32 %v960_v34, %v958_v22 }
 0x24d   : > { %466 = vst.msk [vmem:[%s1396_s11] sm:$0xff] %vm454_vm3, %v465_v35  ;;  %v467_v36 = vpack.c.bf16 %v465_v35, %v465_v35 }
 0x24f   : > { %824 = vmatmul.msk.bf16.vlgmr.msra.gmra.mxu3 %vm454_vm3, %v467_v36 }
 0x25b   : > { %v500_v37 = vpop.permute.xlu1 %499 }
 0x25c   : > { %v505_v38 = vsel %vm434_vm2, %v500_v37, 0 }
 0x25d   : > { %514 = vmatpush.bf16.xpose.msrb.mxu3 %v505_v38 }
 0x263   : > { %v539_v40 = vpop.permute.xlu1 %538 }
 0x264   : > { %825 = vmatmul.msk.bf16.vlgmr.msrb.gmra.mxu3 %vm434_vm2, %v495_v39  ;;  %v544_v41 = vsel %vm472_vm4, %v539_v40, 0 }
 0x265   : > { %553 = vmatpush.bf16.msrb.mxu0 %v544_v41 }
 0x2d2   : > { %v485_v42 = vpop.f32.mrf.mxu3 }
 0x2d3   : > { %v489_v63 = vpack.c.bf16 %v485_v42, %v485_v42 }
 0x2da   : > { %v487_v43 = vpop.f32.mrf.mxu3 }
 0x2e7   : > { %v516_v44 = vpop.f32.mrf.mxu3 }
 0x2e8   : > { %v520_v45 = vsel %vm454_vm3, %v516_v44, -inf }
 0x2e9   : > { %521 = vmax.xlane.f32.xlu2 %v520_v45 }
 0x2ef   : > { %v518_v46 = vpop.f32.mrf.mxu3 }
 0x35c   : > { %v522_v47 = vpop.xlane.xlu2 %521 }
 0x35d   : > { %v523_v48 = vsub.f32 %v516_v44, %v522_v47 }
 0x35f   : > { %v524_v49 = vmul.f32 1.442695, %v523_v48 }
 0x361   : > { %961 = vpow2.f32 %v524_v49 }
 0x367   : > { %v962_v50 = vpop.eup %961 }
 0x368   : > { %v526_v51 = vsel %vm454_vm3, %v962_v50, 0.0 }
 0x369   : > { %527 = vadd.xlane.f32.xlu0 %v526_v51 }
 0x3dc   : > { %v528_v52 = vpop.xlane.xlu0 %527 }
 0x3dd   : > { %963 = vrcp.f32 %v528_v52 }
 0x3e3   : > { %v964_v53 = vpop.eup %963 }
 0x3e4   : > { %v530_v54 = vmul.f32 %v964_v53, %v962_v50 }
 0x3e6   : > { %826 = vst.msk [vmem:[%s1396_s11 + $0x8] sm:$0xff] %vm454_vm3, %v530_v54  ;;  %v533_v55 = vpack.c.bf16 %v530_v54, %v530_v54 }
 0x3e8   : > { %827 = vmatmul.msk.bf16.vlgmr.msrb.gmra.mxu0 %vm454_vm3, %v533_v55 }
 0x465   : > { %v555_v58 = vpop.f32.mrf.mxu0 }
 0x466   : > { %v559_v59 = vpack.c.bf16 %v555_v58, %v555_v58 }
 0x468   : > { %v561_v60 = vunpack.c.l.b16 %v559_v59 }
 0x46a   : > { %v562_v61 = vpack.c.b16 %v561_v60, %v561_v60 }
 0x46c   : > { %563 = vrot.lane.b32.xlu1 %v562_v61, %s1216_s18 }
 0x46d   : > { %v557_v62 = vpop.f32.mrf.mxu0 }
 0x4de   : > { %v564_v0 = vpop.permute.xlu1 %563 }
 0x4df   : > { %v567_v1 = vsel %vm434_vm2, %v489_v63, %v564_v0 }
 0x4e0   : > { %836 = vmatmul.msk.bf16.vlgmr.msrb.gmra.mxu1 %vm368_vm0, %v567_v1 }
 0x4e1   : > { %1112 = shalt.err (!%p1109_p13)
}
 0x4e2   : > { %s1217_s11 = smov 128   ;;  %s1218_s30 = smov 8   ;;  %v956_v2 = vld [vmem:[%s1474_s4] ss:$0 sm:$0xff] }
 0x4e3   : > { %866 = dma.vmem_to_hbm [thread:$0]  (%p1345_p4), %s639_s14, 256, %s641_s12, %s610_s29, %s1217_s11, %s1217_s11, %s1218_s30  }
 0x4e4   : > { %s839_s27 = sshll.u32 %s1199_s24, 3  ;;  %s803_s9 = sshll.u32 %s1367_s1, 3 }
 0x4e5   : > { %s621_s0 = scalar_lea.hbm %s1475_s5, %s839_s27  ;;  %s338_s8 = scalar_lea.vmem [#allocation12], %s803_s9 }
 0x4e6   : > { %s623_s13 = sshll.u32 %s338_s8, 4  ;;  %s625_s18 = sshll.u32 %s621_s0, 4  ;;  %s624_s13 = int_to_ptr.vmem [resolvable:$true] %s623_s13  ;;  %s626_s18 = int_to_ptr.hbm [resolvable:$true] %s625_s18 }
 0x4e7   : > { %s605_s24 = scalar_lea.sflag [#allocation6], %s1367_s1  ;;  %s1127_s14 = sshra.s32 %s626_s18, 4  ;;  %s1128_s14 = int_to_ptr.hbm [resolvable:$true] %s1127_s14 }
 0x4e8   : > { %s1129_s12 = scalar_lea.hbm %s1128_s14, 8  ;;  %s1133_s30 = scalar_lea.hbm %s1475_s5, 16 }
 0x4e9   : > { %p1130_p0 = scmp.ne.s32.totalorder %s1128_s14, %s1129_s12  ;;  %p1134_p8 = scmp.lt.s32.totalorder %s1128_s14, %s1475_s5 }
 0x4ea   : > { %p1135_p1 = scmp.lt.s32.totalorder %s1133_s30, %s1129_s12 }
 0x4eb   : > { %p1131_p2 = pnand %p1130_p0, %p1345_p4 }
 0x4ec   : > { %p1136_p3 = por %p1135_p1, %p1134_p8 }
 0x4ed   : > { %p1132_p5 = pneg %p1131_p2 }
 0x4ef   : > { %p1137_p9 = pnand %p1136_p3, %p1132_p5 }
 0x55d   : > { %v599_v3 = vpop.f32.mrf.mxu1 }
 0x55e   : > { %v600_v4 = vadd.f32 %v956_v2, %v599_v3 }
 0x560   : > { %603 = vst.msk [vmem:[%s338_s8] sm:$0xff] %vm368_vm0, %v600_v4 }
 0x561   : > { %1140 = shalt.err (!%p1137_p9)
}
 0x562   : > { %865 = dma.vmem_to_hbm [thread:$0]  (%p1345_p4), %s624_s13, 128, %s626_s18, %s605_s24  }
 0x565   : > { %v601_v5 = vpop.f32.mrf.mxu1 }
 0x566 PF: > { %s655_s1 = sand.u32 1, %s1187_s21   ;;  %p884_p10 = pnand %p795_p6, %p1353_p7 }
 0x567   : > { %s656_s7 = scalar_lea.sflag [#allocation6], %s655_s1 }
 0x568   : > { %p885_p11 = pneg %p884_p10 }
 0x56a   : > { %1178 = dma.done.wait (%p885_p11), %s656_s7, 128  }
 0x56b   : > { %1180 = vsyncadd (%p885_p11), %s656_s7, 4294967168  ;;  %s666_s28 = scalar_lea.sflag [#allocation14], %s655_s1 }
 0x56c   : > { %1182 = dma.done.wait (%p885_p11), %s666_s28, 256  }
 0x56d   : > { %1184 = vsyncadd (%p885_p11), %s666_s28, 4294967040  ;;  %s28_s26 = sadd.s32 1, %s1207_s26   ;;  %s1488_s21 = smov %s1191_s22 }
 0x56e   : > { %p25_p12 = scmp.ge.s32.totalorder %s28_s26, 4   ;;  %s1489_s22 = smov %s1195_s23 }
 0x56f   : > { %s1490_s23 = smov %s1351_s16  ;;  %s1491_s24 = smov %s1203_s25 }
 0x570   : > { %s1492_s25 = smov %s1494_s10  ;;  %27 = sbr.rel (!%p25_p12) target bundleno = 13 (0xd), region = 120 }
 0x575   :  { %672 = vsyncpa [#allocation5], 1 }
 0x576   :  { %674 = vsyncpa [#allocation5 + $0x1], 1 }
 0x577   :  { %675 = vsyncpa [#allocation8], 1 }
 0x578   :  { %676 = vsyncpa [#allocation11], 1 }
 0x579   :  { %677 = vsyncpa [#allocation6], 1 }
 0x57a   :  { %679 = vsyncpa [#allocation6 + $0x1], 1 }
 0x57b   :  { %680 = vsyncpa [#allocation14], 1 }
 0x57c   :  { %682 = vsyncpa [#allocation14 + $0x1], 1 }

// kernel: tpu_custom_call.1
= control target key start
LH: loop header
LB: loop body
LE: loop exit
PB: predicated region body
PF: predicated region fallthrough
CT: control target
= control target key end

     0   :  { %s1470_s0 = inlined_call_operand.hbm [shape: bf16[2,8,32], index: 0, kind: input, shape index: {}]   ;;  %s1471_s1 = inlined_call_operand.hbm [shape: bf16[32,32], index: 1, kind: input, shape index: {}]   ;;  %s1472_s2 = inlined_call_operand.hbm [shape: bf16[32,64], index: 2, kind: input, shape index: {}]   ;;  %s1473_s3 = inlined_call_operand.hbm [shape: bf16[32,32], index: 3, kind: input, shape index: {}]   ;;  %s1474_s4 = inlined_call_operand.vmem [shape: f32[1,32], index: 4, kind: input, shape index: {}]   ;;  %s1475_s5 = inlined_call_operand.hbm [shape: f32[2,8,32], index: 5, kind: output, shape index: {0}]   ;;  %s1476_s6 = inlined_call_operand.hbm [shape: f32[2,2,8,8], index: 6, kind: output, shape index: {1}]  }
   0x1   :  { %1477 = sst [smem:[#allocation20_spill]] %s1470_s0 }
   0x2   :  { %1478 = sst [smem:[#allocation21_spill]] %s1471_s1 }
   0x3   :  { %12 = vsyncpa [#allocation5], 0 }
   0x4   :  { %14 = vsyncpa [#allocation5 + $0x1], 0 }
   0x5   :  { %15 = vsyncpa [#allocation8], 0 }
   0x6   :  { %16 = vsyncpa [#allocation11], 0 }
   0x7   :  { %17 = vsyncpa [#allocation6], 0 }
   0x8   :  { %19 = vsyncpa [#allocation6 + $0x1], 0 }
   0x9   :  { %20 = vsyncpa [#allocation14], 0 }
   0xa   :  { %22 = vsyncpa [#allocation14 + $0x1], 0  ;;  %s1254_s21 = smov 0   ;;  %s1256_s22 = smov 0  }
   0xb   :  { %s1258_s23 = smov 0   ;;  %s1260_s24 = smov 0  }
   0xc   :  { %s1262_s25 = smov 0   ;;  %s1264_s26 = smov 0  }
   0xd LB: > { %s789_s27 = sadd.s32 4294967295, %s1207_s26   ;;  %p791_p0 = scmp.ge.s32.totalorder %s1207_s26, 1  ;;  %s1207_s26 = sphi %s1264_s26, %s28_s26   ;;  %s1203_s25 = sphi %s1262_s25, %s1492_s25   ;;  %s1199_s24 = sphi %s1260_s24, %s1491_s24   ;;  %s1195_s23 = sphi %s1258_s23, %s1490_s23   ;;  %s1191_s22 = sphi %s1256_s22, %s1489_s22   ;;  %s1187_s21 = sphi %s1254_s21, %s1488_s21  }
   0xe   : > { %p1288_p1 = scmp.eq.s32.totalorder %s789_s27, 0  ;;  %p211_p2 = scmp.lt.s32.totalorder %s1207_s26, 3 }
   0xf   : > { %s1480_s1 = sld [smem:[#allocation21_spill]]  ;;  %s1209_s9 = smov [#allocation7]  }
  0x10   : > { %p1296_p3 = pnand %p791_p0, %p211_p2  ;;  %s224_s10 = sshll.u32 %s1209_s9, 4  ;;  %s225_s10 = int_to_ptr.vmem [resolvable:$true] %s224_s10 }
  0x11   : > { %p795_p6 = scmp.ge.s32.totalorder %s1207_s26, 2  ;;  %s236_s14 = sshll.u32 %s1472_s2, 4  ;;  %s237_s14 = int_to_ptr.hbm [resolvable:$true] %s236_s14 }
  0x12   : > { %p869_p4 = pneg %p1296_p3  ;;  %s1210_s15 = smov 64  }
  0x13   : > { %s1211_s16 = smov 4   ;;  %s1212_s17 = smov [#allocation9]  }
  0x14   : > { %p1304_p5 = pnand %p869_p4, %p1288_p1  ;;  %s238_s18 = sshll.u32 %s1212_s17, 4  ;;  %s239_s18 = int_to_ptr.vmem [resolvable:$true] %s238_s18 }
  0x15   : > { %s222_s7 = sshll.u32 %s1480_s1, 4  ;;  %s250_s29 = sshll.u32 %s1473_s3, 4  ;;  %s223_s7 = int_to_ptr.hbm [resolvable:$true] %s222_s7  ;;  %s251_s29 = int_to_ptr.hbm [resolvable:$true] %s250_s29 }
  0x16   : > { %872 = dma.hbm_to_vmem [thread:$0]  (!%p1304_p5), %s223_s7, 256, %s225_s10, [#allocation8], %s1210_s15, %s1210_s15, %s1211_s16  }
  0x17   : > { %875 = dma.hbm_to_vmem [thread:$0]  (!%p1304_p5), %s237_s14, 256, %s239_s18, [#allocation8], %s1210_s15, %s1210_s15, %s1211_s16  }
  0x18   : > { %s1213_s30 = smov [#allocation10]   ;;  %s790_s7 = sadd.s32 4294967294, %s1207_s26  }
  0x19   : > { %s252_s9 = sshll.u32 %s1213_s30, 4  ;;  %s40_s10 = sadd.s32 1, %s1203_s25  ;;  %s253_s9 = int_to_ptr.vmem [resolvable:$true] %s252_s9 }
  0x1a   : > { %878 = dma.hbm_to_vmem [thread:$0]  (!%p1304_p5), %s251_s29, 256, %s253_s9, [#allocation11], %s1210_s15, %s1210_s15, %s1211_s16  }
  0x1b   : > { %s47_s12 = sadd.s32 1, %s1195_s23  ;;  %p42_p7 = scmp.ge.s32.totalorder %s40_s10, 2 }
  0x1c   : > { %p54_p8 = scmp.ne.s32.totalorder %s1195_s23, %s1191_s22  ;;  %p55_p9 = scmp.eq.s32.totalorder %s1207_s26, 0 }
  0x1d   : > { %p60_p10 = scmp.ne.s32.totalorder %s1191_s22, %s1187_s21  ;;  %s1494_s10 = smov (%p42_p7, %s40_s10), 0 }
  0x1e   : > { %p1331_p11 = por %p55_p9, %p54_p8  ;;  %s44_s14 = ssub.s32 %s1203_s25, %s1494_s10 }
  0x1f   : > { %p1337_p12 = por %p1288_p1, %p60_p10  ;;  %p170_p13 = scmp.eq.s32.totalorder %s789_s27, 1 }
  0x20   : > { %p45_p0 = scmp.eq.s32.totalorder %s44_s14, 0  ;;  %p176_p2 = scmp.eq.s32.totalorder %s790_s7, 1 }
  0x21   : > { %p1345_p4 = por %p170_p13, %p54_p8  ;;  %p893_p5 = scmp.lt.s32.totalorder %s1207_s26, 2 }
  0x22   : > { %s1351_s16 = scalar_select %p45_p0, %s1195_s23, %s47_s12  }
  0x23   : > { %p1353_p7 = por %p176_p2, %p60_p10  ;;  %s269_s18 = sand.u32 1, %s1195_s23  }
  0x24   : > { %s796_s19 = sshll.u32 %s269_s18, 2  ;;  %s797_s20 = sshll.u32 %s1203_s25, 2 }
  0x25   : > { %s1487_s0 = sld [smem:[#allocation20_spill]]  ;;  %s273_s9 = scalar_lea.vmem [#allocation4], %s796_s19 }
  0x26   : > { %s281_s7 = sshll.u32 %s273_s9, 4  ;;  %p880_p8 = pnand %p893_p5, %p1331_p11  ;;  %s282_s7 = int_to_ptr.vmem [resolvable:$true] %s281_s7 }
  0x27   : > { %s270_s12 = scalar_lea.sflag [#allocation5], %s269_s18  ;;  %s1367_s1 = sand.u32 (!%p1296_p3), 1, %s1191_s22  }
  0x28   : > { %s799_s29 = sshll.u32 (!%p1296_p3), %s1367_s1, 2 }
  0x29   : > { %290 = sbr.rel (%p1296_p3) target bundleno = 1382 (0x566), region = 40  ;;  %s296_s19 = scalar_lea.vmem (!%p1296_p3), [#allocation4], %s799_s29 }
  0x2b   : > { %s277_s27 = scalar_lea.hbm %s1487_s0, %s797_s20  ;;  %s293_s20 = scalar_lea.sflag (!%p1296_p3), [#allocation5], %s1367_s1 }
  0x2c   : > { %s279_s14 = sshll.u32 %s277_s27, 4  ;;  %s280_s14 = int_to_ptr.hbm [resolvable:$true] %s279_s14 }
  0x2d   : > { %882 = dma.hbm_to_vmem [thread:$0]  (!%p880_p8), %s280_s14, 64, %s282_s7, %s270_s12  }
  0x2e   : > { %1166 = dma.done.wait (%p1337_p12), %s293_s20, 64  }
  0x2f   : > { %1168 = vsyncadd (%p1337_p12), %s293_s20, 4294967232 }
  0x30   : > { %1170 = dma.done.wait (%p1288_p1), [#allocation8], 512  }
  0x31   : > { %1172 = vsyncadd (%p1288_p1), [#allocation8], 4294966784 }
  0x32   : > { %1174 = dma.done.wait (%p1288_p1), [#allocation11], 256  }
  0x33   : > { %1176 = vsyncadd (%p1288_p1), [#allocation11], 4294967040  ;;  %v845_v0 = vld [vmem:[#allocation9 + $0x8] sm:$0xff]  ;;  %v847_v1 = vld [vmem:[#allocation7 + $0x8] sm:$0xff]  ;;  %vm368_vm0 = vcmask 261120   ;;  %vm386_vm1 = vcmask 257024  }
  0x34   : > { %378 = vmatpush.bf16.msra.mxu0 %v845_v0  ;;  %v844_v2 = vld [vmem:[#allocation9] sm:$0xff]  ;;  %425 = vmatpush.bf16.msra.mxu1 %v847_v1  ;;  %v846_v3 = vld [vmem:[#allocation7] sm:$0xff]  ;;  %v351_v4 = vld [vmem:[%s296_s19] sm:$0xf]  ;;  %vm434_vm2 = vcmask 130048   ;;  %s1214_s28 = smov 112  }
  0x35   : > { %v398_v5 = vld [vmem:[%s296_s19] sm:$0xf]  ;;  %vm454_vm3 = vcmask 64512   ;;  %s1215_s8 = smov 96   ;;  %vm472_vm4 = vcmask 1043456   ;;  %s804_s13 = sshll.u32 %s1367_s1, 4 }
  0x36   : > { %s1396_s11 = scalar_lea.vmem [#allocation13], %s804_s13  ;;  %v849_v56 = vld [vmem:[#allocation10 + $0x8] sm:$0xff]  ;;  %v848_v57 = vld [vmem:[#allocation10] sm:$0xff]  ;;  %s1216_s18 = smov 16  }
  0x37   : > { %s850_s30 = sshll.u32 %s1199_s24, 4  ;;  %s638_s14 = sshll.u32 %s1396_s11, 4  ;;  %s639_s14 = int_to_ptr.vmem [resolvable:$true] %s638_s14 }
  0x38   : > { %379 = vmatpush.bf16.msra.mxu0 %v844_v2  ;;  %426 = vmatpush.bf16.msra.mxu1 %v846_v3  ;;  %s637_s7 = scalar_lea.hbm %s1476_s6, %s850_s30  ;;  %s610_s29 = scalar_lea.sflag [#allocation14], %s1367_s1 }
  0x39   : > { %s640_s12 = sshll.u32 %s637_s7, 4  ;;  %s1105_s13 = scalar_lea.hbm %s1476_s6, 32  ;;  %s641_s12 = int_to_ptr.hbm [resolvable:$true] %s640_s12 }
  0x3a   : > { %s1099_s20 = sshra.s32 %s641_s12, 4  ;;  %s1100_s20 = int_to_ptr.hbm [resolvable:$true] %s1099_s20 }
  0x3b   : > { %813 = vmatmul.msk.bf16.vlgmr.msra.gmra.mxu0 %vm368_vm0, %v351_v4  ;;  %822 = vmatmul.msk.bf16.vlgmr.msra.gmra.mxu1 %vm368_vm0, %v398_v5  ;;  %s1101_s19 = scalar_lea.hbm %s1100_s20, 16  ;;  %p1106_p10 = scmp.lt.s32.totalorder %s1100_s20, %s1476_s6 }
  0x3c   : > { %596 = vmatpush.bf16.msrb.mxu1 %v849_v56  ;;  %p1102_p1 = scmp.ne.s32.totalorder %s1100_s20, %s1101_s19  ;;  %p1107_p11 = scmp.lt.s32.totalorder %s1105_s13, %s1101_s19 }
  0x3e   : > { %p1103_p3 = pnand %p1102_p1, %p1345_p4  ;;  %p1108_p12 = por %p1107_p11, %p1106_p10 }
  0x40   : > { %597 = vmatpush.bf16.msrb.mxu1 %v848_v57  ;;  %p1104_p9 = pneg %p1103_p3 }
  0x42   : > { %p1109_p13 = pnand %p1108_p12, %p1104_p9 }
  0xb8   : > { %v381_v6 = vpop.f32.mrf.mxu0  ;;  %v428_v8 = vpop.f32.mrf.mxu1 }
  0xb9   : > { %v385_v7 = vpack.c.bf16 %v381_v6, %v381_v6  ;;  %v432_v9 = vpack.c.bf16 %v428_v8, %v428_v8 }
  0xbb   : > { %387 = vst.msk [vmem:[#allocation2] sm:$0xf] %vm386_vm1, %v385_v7  ;;  %v492_v10 = vunpack.c.l.b16 %v432_v9 }
  0xbd   : > { %v493_v11 = vpack.c.b16 %v492_v10, %v492_v10 }
  0xbf   : > { %494 = vrot.lane.b32.xlu2 %v493_v11, %s1214_s28 }
  0xc0   : > { %v383_v12 = vpop.f32.mrf.mxu0  ;;  %v430_v13 = vpop.f32.mrf.mxu1 }
  0xc2   : > { %v433_v14 = vld [vmem:[#allocation2] sm:$0xf] }
  0xc3   : > { %v439_v15 = vsel %vm434_vm2, %v433_v14, 0  ;;  %v490_v27 = vld [vmem:[#allocation2] sm:$0xf] }
  0xc4   : > { %448 = vmatpush.bf16.xpose.msra.mxu2 %v439_v15  ;;  %v497_v28 = vunpack.c.l.b16 %v490_v27 }
  0xc6   : > { %v498_v29 = vpack.c.b16 %v497_v28, %v497_v28 }
  0xcb   : > { %823 = vmatmul.msk.bf16.vlgmr.msra.gmra.mxu2 %vm434_vm2, %v432_v9 }
 0x119   : > { %v495_v39 = vpop.permute.xlu2 %494 }
 0x14e   : > { %v450_v16 = vpop.f32.mrf.mxu2 }
 0x14f   : > { %v455_v17 = vsel %vm454_vm3, %v450_v16, -inf }
 0x150   : > { %456 = vmax.xlane.f32.xlu0 %v455_v17 }
 0x156   : > { %v452_v18 = vpop.f32.mrf.mxu2 }
 0x164   : > { %389 = vrot.lane.b32.xlu0 %v385_v7, %s1215_s8 }
 0x1c3   : > { %v457_v19 = vpop.xlane.xlu0 %456 }
 0x1c4   : > { %v458_v20 = vsub.f32 %v450_v16, %v457_v19 }
 0x1c6   : > { %v459_v21 = vmul.f32 1.442695, %v458_v20 }
 0x1c8   : > { %957 = vpow2.f32 %v459_v21 }
 0x1ce   : > { %v958_v22 = vpop.eup %957 }
 0x1cf   : > { %v461_v23 = vsel %vm454_vm3, %v958_v22, 0.0 }
 0x1d0   : > { %462 = vadd.xlane.f32.xlu1 %v461_v23 }
 0x1d6   : > { %v390_v24 = vpop.permute.xlu0 %389 }
 0x1d7   : > { %392 = vst.msk [vmem:[#allocation3] sm:$0xf] %vm386_vm1, %v390_v24 }
 0x1de   : > { %v468_v25 = vld [vmem:[#allocation3] sm:$0xf] }
 0x1df   : > { %v474_v26 = vsel %vm472_vm4, %v468_v25, 0  ;;  %v534_v30 = vld [vmem:[#allocation3] sm:$0xf] }
 0x1e0   : > { %483 = vmatpush.bf16.msra.mxu3 %v474_v26  ;;  %v536_v31 = vunpack.c.l.b16 %v534_v30 }
 0x1e2   : > { %v537_v32 = vpack.c.b16 %v536_v31, %v536_v31 }
 0x1e9   : > { %499 = vrot.lane.b32.xlu1 %v498_v29, %s1214_s28 }
 0x1f1   : > { %538 = vrot.lane.b32.xlu1 %v537_v32, %s1214_s28 }
 0x243   : > { %v463_v33 = vpop.xlane.xlu1 %462 }
 0x244   : > { %959 = vrcp.f32 %v463_v33 }
 0x24a   : > { %v960_v34 = vpop.eup %959 }
 0x24b   : > { %v465_v35 = vmul.f32 %v960_v34, %v958_v22 }
 0x24d   : > { %466 = vst.msk [vmem:[%s1396_s11] sm:$0xff] %vm454_vm3, %v465_v35  ;;  %v467_v36 = vpack.c.bf16 %v465_v35, %v465_v35 }
 0x24f   : > { %824 = vmatmul.msk.bf16.vlgmr.msra.gmra.mxu3 %vm454_vm3, %v467_v36 }
 0x25b   : > { %v500_v37 = vpop.permute.xlu1 %499 }
 0x25c   : > { %v505_v38 = vsel %vm434_vm2, %v500_v37, 0 }
 0x25d   : > { %514 = vmatpush.bf16.xpose.msrb.mxu3 %v505_v38 }
 0x263   : > { %v539_v40 = vpop.permute.xlu1 %538 }
 0x264   : > { %825 = vmatmul.msk.bf16.vlgmr.msrb.gmra.mxu3 %vm434_vm2, %v495_v39  ;;  %v544_v41 = vsel %vm472_vm4, %v539_v40, 0 }
 0x265   : > { %553 = vmatpush.bf16.msrb.mxu0 %v544_v41 }
 0x2d2   : > { %v485_v42 = vpop.f32.mrf.mxu3 }
 0x2d3   : > { %v489_v63 = vpack.c.bf16 %v485_v42, %v485_v42 }
 0x2da   : > { %v487_v43 = vpop.f32.mrf.mxu3 }
 0x2e7   : > { %v516_v44 = vpop.f32.mrf.mxu3 }
 0x2e8   : > { %v520_v45 = vsel %vm454_vm3, %v516_v44, -inf }
 0x2e9   : > { %521 = vmax.xlane.f32.xlu2 %v520_v45 }
 0x2ef   : > { %v518_v46 = vpop.f32.mrf.mxu3 }
 0x35c   : > { %v522_v47 = vpop.xlane.xlu2 %521 }
 0x35d   : > { %v523_v48 = vsub.f32 %v516_v44, %v522_v47 }
 0x35f   : > { %v524_v49 = vmul.f32 1.442695, %v523_v48 }
 0x361   : > { %961 = vpow2.f32 %v524_v49 }
 0x367   : > { %v962_v50 = vpop.eup %961 }
 0x368   : > { %v526_v51 = vsel %vm454_vm3, %v962_v50, 0.0 }
 0x369   : > { %527 = vadd.xlane.f32.xlu0 %v526_v51 }
 0x3dc   : > { %v528_v52 = vpop.xlane.xlu0 %527 }
 0x3dd   : > { %963 = vrcp.f32 %v528_v52 }
 0x3e3   : > { %v964_v53 = vpop.eup %963 }
 0x3e4   : > { %v530_v54 = vmul.f32 %v964_v53, %v962_v50 }
 0x3e6   : > { %826 = vst.msk [vmem:[%s1396_s11 + $0x8] sm:$0xff] %vm454_vm3, %v530_v54  ;;  %v533_v55 = vpack.c.bf16 %v530_v54, %v530_v54 }
 0x3e8   : > { %827 = vmatmul.msk.bf16.vlgmr.msrb.gmra.mxu0 %vm454_vm3, %v533_v55 }
 0x465   : > { %v555_v58 = vpop.f32.mrf.mxu0 }
 0x466   : > { %v559_v59 = vpack.c.bf16 %v555_v58, %v555_v58 }
 0x468   : > { %v561_v60 = vunpack.c.l.b16 %v559_v59 }
 0x46a   : > { %v562_v61 = vpack.c.b16 %v561_v60, %v561_v60 }
 0x46c   : > { %563 = vrot.lane.b32.xlu1 %v562_v61, %s1216_s18 }
 0x46d   : > { %v557_v62 = vpop.f32.mrf.mxu0 }
 0x4de   : > { %v564_v0 = vpop.permute.xlu1 %563 }
 0x4df   : > { %v567_v1 = vsel %vm434_vm2, %v489_v63, %v564_v0 }
 0x4e0   : > { %836 = vmatmul.msk.bf16.vlgmr.msrb.gmra.mxu1 %vm368_vm0, %v567_v1 }
 0x4e1   : > { %1112 = shalt.err (!%p1109_p13)
}
 0x4e2   : > { %s1217_s11 = smov 128   ;;  %s1218_s30 = smov 8   ;;  %v956_v2 = vld [vmem:[%s1474_s4] ss:$0 sm:$0xff] }
 0x4e3   : > { %866 = dma.vmem_to_hbm [thread:$0]  (%p1345_p4), %s639_s14, 256, %s641_s12, %s610_s29, %s1217_s11, %s1217_s11, %s1218_s30  }
 0x4e4   : > { %s839_s27 = sshll.u32 %s1199_s24, 3  ;;  %s803_s9 = sshll.u32 %s1367_s1, 3 }
 0x4e5   : > { %s621_s0 = scalar_lea.hbm %s1475_s5, %s839_s27  ;;  %s338_s8 = scalar_lea.vmem [#allocation12], %s803_s9 }
 0x4e6   : > { %s623_s13 = sshll.u32 %s338_s8, 4  ;;  %s625_s18 = sshll.u32 %s621_s0, 4  ;;  %s624_s13 = int_to_ptr.vmem [resolvable:$true] %s623_s13  ;;  %s626_s18 = int_to_ptr.hbm [resolvable:$true] %s625_s18 }
 0x4e7   : > { %s605_s24 = scalar_lea.sflag [#allocation6], %s1367_s1  ;;  %s1127_s14 = sshra.s32 %s626_s18, 4  ;;  %s1128_s14 = int_to_ptr.hbm [resolvable:$true] %s1127_s14 }
 0x4e8   : > { %s1129_s12 = scalar_lea.hbm %s1128_s14, 8  ;;  %s1133_s30 = scalar_lea.hbm %s1475_s5, 16 }
 0x4e9   : > { %p1130_p0 = scmp.ne.s32.totalorder %s1128_s14, %s1129_s12  ;;  %p1134_p8 = scmp.lt.s32.totalorder %s1128_s14, %s1475_s5 }
 0x4ea   : > { %p1135_p1 = scmp.lt.s32.totalorder %s1133_s30, %s1129_s12 }
 0x4eb   : > { %p1131_p2 = pnand %p1130_p0, %p1345_p4 }
 0x4ec   : > { %p1136_p3 = por %p1135_p1, %p1134_p8 }
 0x4ed   : > { %p1132_p5 = pneg %p1131_p2 }
 0x4ef   : > { %p1137_p9 = pnand %p1136_p3, %p1132_p5 }
 0x55d   : > { %v599_v3 = vpop.f32.mrf.mxu1 }
 0x55e   : > { %v600_v4 = vadd.f32 %v956_v2, %v599_v3 }
 0x560   : > { %603 = vst.msk [vmem:[%s338_s8] sm:$0xff] %vm368_vm0, %v600_v4 }
 0x561   : > { %1140 = shalt.err (!%p1137_p9)
}
 0x562   : > { %865 = dma.vmem_to_hbm [thread:$0]  (%p1345_p4), %s624_s13, 128, %s626_s18, %s605_s24  }
 0x565   : > { %v601_v5 = vpop.f32.mrf.mxu1 }
 0x566 PF: > { %s655_s1 = sand.u32 1, %s1187_s21   ;;  %p884_p10 = pnand %p795_p6, %p1353_p7 }
 0x567   : > { %s656_s7 = scalar_lea.sflag [#allocation6], %s655_s1 }
 0x568   : > { %p885_p11 = pneg %p884_p10 }
 0x56a   : > { %1178 = dma.done.wait (%p885_p11), %s656_s7, 128  }
 0x56b   : > { %1180 = vsyncadd (%p885_p11), %s656_s7, 4294967168  ;;  %s666_s28 = scalar_lea.sflag [#allocation14], %s655_s1 }
 0x56c   : > { %1182 = dma.done.wait (%p885_p11), %s666_s28, 256  }
 0x56d   : > { %1184 = vsyncadd (%p885_p11), %s666_s28, 4294967040  ;;  %s28_s26 = sadd.s32 1, %s1207_s26   ;;  %s1488_s21 = smov %s1191_s22 }
 0x56e   : > { %p25_p12 = scmp.ge.s32.totalorder %s28_s26, 4   ;;  %s1489_s22 = smov %s1195_s23 }
 0x56f   : > { %s1490_s23 = smov %s1351_s16  ;;  %s1491_s24 = smov %s1203_s25 }
 0x570   : > { %s1492_s25 = smov %s1494_s10  ;;  %27 = sbr.rel (!%p25_p12) target bundleno = 13 (0xd), region = 120 }
 0x575   :  { %672 = vsyncpa [#allocation5], 1 }
 0x576   :  { %674 = vsyncpa [#allocation5 + $0x1], 1 }
 0x577   :  { %675 = vsyncpa [#allocation8], 1 }
 0x578   :  { %676 = vsyncpa [#allocation11], 1 }
 0x579   :  { %677 = vsyncpa [#allocation6], 1 }
 0x57a   :  { %679 = vsyncpa [#allocation6 + $0x1], 1 }
 0x57b   :  { %680 = vsyncpa [#allocation14], 1 }
 0x57c   :  { %682 = vsyncpa [#allocation14 + $0x1], 1 }

</bundles_post_ra>
